<compile_context>
chip_gen: v6e
topology: v6e:2x2x1
jax: 0.10.0
libtpu: 0.0.40
codegen_flags: <defaults>
</compile_context>

<pallas_src>
from functools import partial

import jax
import jax.numpy as jnp
from jax.experimental import pallas as pl
from jax.experimental.pallas import tpu as pltpu


def _round_up(x, m):
    return (x + m - 1) // m * m


def _pad2d(a, rows, cols):
    r = 0 if rows is None else rows - a.shape[0]
    c = 0 if cols is None else cols - a.shape[1]
    if r == 0 and c == 0:
        return a
    return jnp.pad(a, ((0, r), (0, c)))


def _num_tensorcores():
    # v7x has 2 TensorCores per chip; v5e/v6e have 1.
    try:
        kind = jax.devices()[0].device_kind.lower()
        return 2 if ("v7" in kind or "7x" in kind) else 1
    except Exception:
        return 1


def _vmem_capacity_bytes():
    # Physical VMEM per TensorCore: 128 MiB on v5e/v6e, 64 MiB on v7x.
    try:
        return int(pltpu.get_tpu_info().vmem_capacity_bytes)
    except Exception:
        return 64 * 1024 * 1024  # conservative: assume the smallest (v7x)


# ------------------------------- kernel ------------------------------------

def _wm_lstm_kernel(x_ref, h_ref, c_ref, wx_ref, wh_ref, wc_ref, bg_ref, bc_ref,
                    h_out_ref, c_out_ref):
    Hp = c_ref.shape[-1]
    mxu_dtype = wx_ref.dtype            # bf16 operands, f32 MXU accumulate

    x = x_ref[...]                      # (tb, I)   f32
    h = h_ref[...]                      # (tb, Hp)  f32
    c = c_ref[...]                      # (tb, Hp)  f32 (kept f32 for VPU/EUP math)

    # Gate pre-activations [i|f|o|g]: two accumulating, lane-dense MXU matmuls.
    gates = jnp.dot(x.astype(mxu_dtype), wx_ref[...],
                    preferred_element_type=jnp.float32)
    gates = gates + jnp.dot(h.astype(mxu_dtype), wh_ref[...],
                            preferred_element_type=jnp.float32)
    gates = gates + bg_ref[...]                                 # (tb, 4*Hp)

    # Peephole pre-activations [i|f|o]; one wide tanh over the (tb, 3*Hp) slab.
    peep = jnp.tanh(jnp.dot(c.astype(mxu_dtype), wc_ref[...],
                            preferred_element_type=jnp.float32) + bc_ref[...])

    # One wide sigmoid over the i|f|o slab (lane-aligned: Hp is a multiple of 128).
    ifo = jax.nn.sigmoid(gates[:, :3 * Hp] + peep)              # (tb, 3*Hp)
    gt = jnp.tanh(gates[:, 3 * Hp:])                            # (tb, Hp)

    it = ifo[:, 0:Hp]
    ft = ifo[:, Hp:2 * Hp]
    ot = ifo[:, 2 * Hp:3 * Hp]

    c_new = ft * c + it * gt
    h_new = ot * jnp.tanh(c_new)

    h_out_ref[...] = h_new
    c_out_ref[...] = c_new


# ------------------------------- wrapper -----------------------------------

def working_memory_lstm_cell(x, h, c, packed, *, block_b=512,
                             single_buffer_weights=True):
    """One WorkingMemoryLSTMCell step with fused/packed weights. Returns (h_new, c_new)."""
    B, I = x.shape
    H = h.shape[1]
    wx, wh, wc, bg, bc = (packed["wx"], packed["wh"], packed["wc"],
                          packed["bg"], packed["bc"])
    Hp = wh.shape[0]                    # lane-padded hidden size (multiple of 128)

    x = x.astype(jnp.float32)
    h = _pad2d(h.astype(jnp.float32), None, Hp)
    c = _pad2d(c.astype(jnp.float32), None, Hp)

    # ---- VMEM budget (per-buffer accounting, not an ad-hoc margin) ----
    n_wbuf = 1 if single_buffer_weights else 2
    w_itemsize = jnp.dtype(wx.dtype).itemsize
    weight_bytes = n_wbuf * ((wx.size + wh.size + wc.size) * w_itemsize
                             # (1, n) biases are sublane-padded to 8 rows in VMEM
                             + 8 * (bg.shape[1] + bc.shape[1]) * 4)

    def act_bytes(tb):
        # double-buffered x/h/c input tiles + double-buffered h_new/c_new output tiles
        return 2 * tb * (I + 2 * Hp) * 4 + 2 * tb * 2 * Hp * 4

    cap = _vmem_capacity_bytes()
    budget = cap - (8 << 20)            # leave DMA / compiler-scratch headroom

    # ---- batch tiling ----
    rb = _round_up(B, 8)
    tb = min(block_b, rb)
    # v7x: keep >= 2 grid steps on the "parallel" batch axis so both TensorCores
    # get work; no-op on single-core v5e/v6e.
    if _num_tensorcores() >= 2 and rb // tb < 2 and rb >= 16:
        tb = _round_up(pl.cdiv(rb, 2), 8)
    # Shrink the batch tile until weights + tiles fit the per-generation budget.
    while tb > 8 and weight_bytes + act_bytes(tb) > budget:
        tb = _round_up(tb // 2, 8)

    Bp = _round_up(rb, tb)
    if Bp != B:
        x = _pad2d(x, Bp, None)
        h = _pad2d(h, Bp, None)
        c = _pad2d(c, Bp, None)
    grid = (Bp // tb,)

    vmem_limit = int(min(max(1.5 * (weight_bytes + act_bytes(tb)) + (4 << 20),
                             16 << 20),
                         budget))

    def const_spec(shape):
        # Weights/biases: constant index_map -> stay resident across grid steps;
        # single-buffer them so the resident copy isn't doubled.
        if single_buffer_weights:
            return pl.BlockSpec(shape, lambda b: (0, 0),
                                pipeline_mode=pl.Buffered(1))
        return pl.BlockSpec(shape, lambda b: (0, 0))

    h_new, c_new = pl.pallas_call(
        _wm_lstm_kernel,
        out_shape=(jax.ShapeDtypeStruct((Bp, Hp), jnp.float32),
                   jax.ShapeDtypeStruct((Bp, Hp), jnp.float32)),
        grid=grid,
        in_specs=[
            pl.BlockSpec((tb, I), lambda b: (b, 0)),    # x batch tile
            pl.BlockSpec((tb, Hp), lambda b: (b, 0)),   # h batch tile
            pl.BlockSpec((tb, Hp), lambda b: (b, 0)),   # c batch tile
            const_spec((I, 4 * Hp)),                    # fused gate weights (x part)
            const_spec((Hp, 4 * Hp)),                   # fused gate weights (h part)
            const_spec((Hp, 3 * Hp)),                   # fused peephole weights
            const_spec((1, 4 * Hp)),                    # fused gate bias (bx + bh)
            const_spec((1, 3 * Hp)),                    # fused peephole bias
        ],
        out_specs=(pl.BlockSpec((tb, Hp), lambda b: (b, 0)),
                   pl.BlockSpec((tb, Hp), lambda b: (b, 0))),
        # Reuse the (padded, f32) h / c buffers for h_new / c_new.
        input_output_aliases={1: 0, 2: 1},
        compiler_params=pltpu.CompilerParams(
            dimension_semantics=("parallel",),
            vmem_limit_bytes=vmem_limit,
        ),
    )(x, h, c, wx, wh, wc, bg, bc)

    if Bp != B or Hp != H:
        h_new = h_new[:B, :H]
        c_new = c_new[:B, :H]
    return h_new, c_new


# ----------------------------- parameters ----------------------------------

def _xavier_uniform(key, out_features, in_features):
    # matches torch.nn.init.xavier_uniform_ on a (out, in) weight
    bound = jnp.sqrt(6.0 / (in_features + out_features))
    return jax.random.uniform(key, (out_features, in_features), jnp.float32,
                              minval=-bound, maxval=bound)


def init_params(key, input_size, hidden_size):
    """Per-gate parameters laid out exactly like the PyTorch module ((out,in) W, (out,) b)."""
    layers = [("Wxi", input_size), ("Whi", hidden_size), ("Wci", hidden_size),
              ("Wxf", input_size), ("Whf", hidden_size), ("Wcf", hidden_size),
              ("Wxo", input_size), ("Who", hidden_size), ("Wco", hidden_size),
              ("Wxg", input_size), ("Whg", hidden_size)]
    keys = jax.random.split(key, len(layers))
    params = {}
    for k, (name, in_f) in zip(keys, layers):
        params[name + "_w"] = _xavier_uniform(k, hidden_size, in_f)
        params[name + "_b"] = jnp.zeros((hidden_size,), jnp.float32)  # nn.init zeros
    return params


def pack_params(p, hidden_size, *, lane=128, weight_dtype=jnp.bfloat16):
    """Fuse the 11 per-gate nn.Linear layers into 3 lane-padded matmul operands + 2 biases.

    Columns of every gate group are padded to Hp = round_up(H, 128) so in-kernel slab
    slices and output stores are lane-aligned; the padded rows/columns are zero so
    they contribute nothing numerically. Weights are stored bf16 (MXU-native), biases f32.
    """
    H = hidden_size
    Hp = _round_up(H, lane)

    def t(name):                       # PyTorch (H, in) -> (in, H) so kernel does v @ W
        return p[name + "_w"].T

    def col_pad(w):                    # (in, H) -> (in, Hp)
        return jnp.pad(w, ((0, 0), (0, Hp - H)))

    wx = jnp.concatenate([col_pad(t("Wxi")), col_pad(t("Wxf")),
                          col_pad(t("Wxo")), col_pad(t("Wxg"))], axis=1)   # (I,  4Hp)
    wh = jnp.concatenate([col_pad(t("Whi")), col_pad(t("Whf")),
                          col_pad(t("Who")), col_pad(t("Whg"))], axis=1)   # (H,  4Hp)
    wc = jnp.concatenate([col_pad(t("Wci")), col_pad(t("Wcf")),
                          col_pad(t("Wco"))], axis=1)                      # (H,  3Hp)
    # Pad the contraction dim H -> Hp (zero rows) so lane-padded h/c tiles multiply cleanly.
    wh = jnp.pad(wh, ((0, Hp - H), (0, 0)))                                # (Hp, 4Hp)
    wc = jnp.pad(wc, ((0, Hp - H), (0, 0)))                                # (Hp, 3Hp)

    def b_pad(b):
        return jnp.pad(b, (0, Hp - H))

    bg = jnp.concatenate([b_pad(p["Wxi_b"] + p["Whi_b"]),
                          b_pad(p["Wxf_b"] + p["Whf_b"]),
                          b_pad(p["Wxo_b"] + p["Who_b"]),
                          b_pad(p["Wxg_b"] + p["Whg_b"])])[None, :]        # (1, 4Hp)
    bc = jnp.concatenate([b_pad(p["Wci_b"]), b_pad(p["Wcf_b"]),
                          b_pad(p["Wco_b"])])[None, :]                     # (1, 3Hp)

    return {"wx": wx.astype(weight_dtype),
            "wh": wh.astype(weight_dtype),
            "wc": wc.astype(weight_dtype),
            "bg": bg.astype(jnp.float32),
            "bc": bc.astype(jnp.float32)}


# ------------------------------ reference ----------------------------------

def _reference(x, h, c, p, *, operand_dtype=jnp.float32):
    """Pure-JAX mirror of the PyTorch forward (per-gate nn.Linear semantics).

    operand_dtype=jnp.bfloat16 mirrors the kernel's bf16 matmul operands
    (f32 accumulate), so the kernel can be checked against it with tight tolerance.
    """
    def cast(v):
        return v.astype(operand_dtype).astype(jnp.float32)

    def lin(name, v):
        return (jnp.dot(cast(v), cast(p[name + "_w"]).T,
                        precision=jax.lax.Precision.HIGHEST)
                + p[name + "_b"])

    tanh_ci = jnp.tanh(lin("Wci", c))
    tanh_cf = jnp.tanh(lin("Wcf", c))
    tanh_co = jnp.tanh(lin("Wco", c))
    it = jax.nn.sigmoid(lin("Wxi", x) + lin("Whi", h) + tanh_ci)
    ft = jax.nn.sigmoid(lin("Wxf", x) + lin("Whf", h) + tanh_cf)
    c_new = ft * c + it * jnp.tanh(lin("Wxg", x) + lin("Whg", h))
    ot = jax.nn.sigmoid(lin("Wxo", x) + lin("Who", h) + tanh_co)
    h_new = ot * jnp.tanh(c_new)
    return h_new, c_new


if __name__ == "__main__":
    B, INPUT_SIZE, HIDDEN_SIZE = 8, 16, 32

    key = jax.random.PRNGKey(0)
    kx, kh, kc, kp = jax.random.split(key, 4)
    x = jax.random.normal(kx, (B, INPUT_SIZE), jnp.float32)
    h = jax.random.normal(kh, (B, HIDDEN_SIZE), jnp.float32)
    c = jax.random.normal(kc, (B, HIDDEN_SIZE), jnp.float32)

    params = init_params(kp, INPUT_SIZE, HIDDEN_SIZE)
    packed = pack_params(params, HIDDEN_SIZE)

    # References first (the kernel aliases/reuses the padded h/c buffers).
    h_ref_f32, c_ref_f32 = _reference(x, h, c, params)
    h_ref_bf, c_ref_bf = _reference(x, h, c, params, operand_dtype=jnp.bfloat16)

    try:
        step = jax.jit(partial(working_memory_lstm_cell, single_buffer_weights=True))
        h_new, c_new = step(x, h, c, packed)
        jax.block_until_ready((h_new, c_new))
    except Exception:
        # Fallback if pipeline_mode=pl.Buffered(1) is rejected by this JAX version.
        step = jax.jit(partial(working_memory_lstm_cell, single_buffer_weights=False))
        h_new, c_new = step(x, h, c, packed)
        jax.block_until_ready((h_new, c_new))

    assert h_new.shape == (B, HIDDEN_SIZE) and c_new.shape == (B, HIDDEN_SIZE)
    # Tight check vs. a reference using the same bf16 operand rounding.
    assert jnp.allclose(h_new, h_ref_bf, atol=1e-4, rtol=1e-4), "h mismatch (bf16-operand ref)"
    assert jnp.allclose(c_new, c_ref_bf, atol=1e-4, rtol=1e-4), "c mismatch (bf16-operand ref)"
    # Loose semantic check vs. the exact f32 PyTorch forward (bf16 operand quantization).
    assert jnp.allclose(h_new, h_ref_f32, atol=1e-1), "h mismatch (f32 ref)"
    assert jnp.allclose(c_new, c_ref_f32, atol=1e-1), "c mismatch (f32 ref)"

    print("KERNEL_OK")
</pallas_src>

<mosaic_0001>
module attributes {stable_mosaic.version = 11 : i64} {
  func.func @_wm_lstm_kernel(%arg0: i32, %arg1: memref<8x16xf32, #tpu.memory_space<vmem>>, %arg2: memref<8x128xf32, #tpu.memory_space<vmem>>, %arg3: memref<8x128xf32, #tpu.memory_space<vmem>>, %arg4: memref<16x512xbf16, #tpu.memory_space<vmem>>, %arg5: memref<128x512xbf16, #tpu.memory_space<vmem>>, %arg6: memref<128x384xbf16, #tpu.memory_space<vmem>>, %arg7: memref<1x512xf32, #tpu.memory_space<vmem>>, %arg8: memref<1x384xf32, #tpu.memory_space<vmem>>, %arg9: memref<8x128xf32, #tpu.memory_space<vmem>>, %arg10: memref<8x128xf32, #tpu.memory_space<vmem>>) attributes {dimension_semantics = [#tpu.dimension_semantics<parallel>], iteration_bounds = array<i64: 1>, scalar_prefetch = 0 : i64, scratch_operands = 0 : i64, tpu.core_type = #tpu.core_type<tc>, window_params = [{transform_indices = @transform_0, window_bounds = array<i64: 8, 16>}, {transform_indices = @transform_1, window_bounds = array<i64: 8, 128>}, {transform_indices = @transform_2, window_bounds = array<i64: 8, 128>}, {pipeline_mode = #tpu.pipeline_mode<synchronous>, transform_indices = @transform_3, window_bounds = array<i64: 16, 512>}, {pipeline_mode = #tpu.pipeline_mode<synchronous>, transform_indices = @transform_4, window_bounds = array<i64: 128, 512>}, {pipeline_mode = #tpu.pipeline_mode<synchronous>, transform_indices = @transform_5, window_bounds = array<i64: 128, 384>}, {pipeline_mode = #tpu.pipeline_mode<synchronous>, transform_indices = @transform_6, window_bounds = array<i64: 1, 512>}, {pipeline_mode = #tpu.pipeline_mode<synchronous>, transform_indices = @transform_7, window_bounds = array<i64: 1, 384>}, {transform_indices = @transform_8, window_bounds = array<i64: 8, 128>}, {transform_indices = @transform_9, window_bounds = array<i64: 8, 128>}]} {
    %c0 = arith.constant 0 : index
    %c0_0 = arith.constant 0 : index
    %0 = vector.load %arg1[%c0, %c0_0] : memref<8x16xf32, #tpu.memory_space<vmem>>, vector<8x16xf32>
    %c0_1 = arith.constant 0 : index
    %c0_2 = arith.constant 0 : index
    %1 = vector.load %arg2[%c0_1, %c0_2] : memref<8x128xf32, #tpu.memory_space<vmem>>, vector<8x128xf32>
    %c0_3 = arith.constant 0 : index
    %c0_4 = arith.constant 0 : index
    %2 = vector.load %arg3[%c0_3, %c0_4] : memref<8x128xf32, #tpu.memory_space<vmem>>, vector<8x128xf32>
    %3 = arith.truncf %0 : vector<8x16xf32> to vector<8x16xbf16>
    %c0_5 = arith.constant 0 : index
    %c0_6 = arith.constant 0 : index
    %4 = vector.load %arg4[%c0_5, %c0_6] : memref<16x512xbf16, #tpu.memory_space<vmem>>, vector<16x512xbf16>
    %cst = arith.constant dense<0.000000e+00> : vector<8x512xf32>
    %5 = tpu.matmul %3, %4, %cst {dimension_numbers = #tpu.dot_dimension_numbers<[1], [0], [0], [1], [0, 0, 1, 1], [], []>} : vector<8x16xbf16>, vector<16x512xbf16>, vector<8x512xf32> -> vector<8x512xf32>
    %6 = arith.truncf %1 : vector<8x128xf32> to vector<8x128xbf16>
    %c0_7 = arith.constant 0 : index
    %c0_8 = arith.constant 0 : index
    %7 = vector.load %arg5[%c0_7, %c0_8] : memref<128x512xbf16, #tpu.memory_space<vmem>>, vector<128x512xbf16>
    %cst_9 = arith.constant dense<0.000000e+00> : vector<8x512xf32>
    %8 = tpu.matmul %6, %7, %cst_9 {dimension_numbers = #tpu.dot_dimension_numbers<[1], [0], [0], [1], [0, 0, 1, 1], [], []>} : vector<8x128xbf16>, vector<128x512xbf16>, vector<8x512xf32> -> vector<8x512xf32>
    %9 = arith.addf %5, %8 : vector<8x512xf32>
    %c0_10 = arith.constant 0 : index
    %c0_11 = arith.constant 0 : index
    %10 = vector.load %arg7[%c0_10, %c0_11] : memref<1x512xf32, #tpu.memory_space<vmem>>, vector<1x512xf32>
    %11 = vector.broadcast %10 : vector<1x512xf32> to vector<8x512xf32>
    %12 = arith.addf %9, %11 : vector<8x512xf32>
    %13 = arith.truncf %2 : vector<8x128xf32> to vector<8x128xbf16>
    %c0_12 = arith.constant 0 : index
    %c0_13 = arith.constant 0 : index
    %14 = vector.load %arg6[%c0_12, %c0_13] : memref<128x384xbf16, #tpu.memory_space<vmem>>, vector<128x384xbf16>
    %cst_14 = arith.constant dense<0.000000e+00> : vector<8x384xf32>
    %15 = tpu.matmul %13, %14, %cst_14 {dimension_numbers = #tpu.dot_dimension_numbers<[1], [0], [0], [1], [0, 0, 1, 1], [], []>} : vector<8x128xbf16>, vector<128x384xbf16>, vector<8x384xf32> -> vector<8x384xf32>
    %c0_15 = arith.constant 0 : index
    %c0_16 = arith.constant 0 : index
    %16 = vector.load %arg8[%c0_15, %c0_16] : memref<1x384xf32, #tpu.memory_space<vmem>>, vector<1x384xf32>
    %17 = vector.broadcast %16 : vector<1x384xf32> to vector<8x384xf32>
    %18 = arith.addf %15, %17 : vector<8x384xf32>
    %19 = math.tanh %18 : vector<8x384xf32>
    %20 = vector.extract_strided_slice %12 {offsets = [0, 0], sizes = [8, 384], strides = [1, 1]} : vector<8x512xf32> to vector<8x384xf32>
    %21 = arith.addf %20, %19 : vector<8x384xf32>
    %22 = arith.negf %21 : vector<8x384xf32>
    %23 = math.exp %22 : vector<8x384xf32>
    %cst_17 = arith.constant 1.000000e+00 : f32
    %24 = vector.broadcast %cst_17 : f32 to vector<8x384xf32>
    %25 = arith.addf %24, %23 : vector<8x384xf32>
    %26 = arith.divf %24, %25 : vector<8x384xf32>
    %27 = vector.extract_strided_slice %12 {offsets = [0, 384], sizes = [8, 128], strides = [1, 1]} : vector<8x512xf32> to vector<8x128xf32>
    %28 = math.tanh %27 : vector<8x128xf32>
    %29 = vector.extract_strided_slice %26 {offsets = [0, 0], sizes = [8, 128], strides = [1, 1]} : vector<8x384xf32> to vector<8x128xf32>
    %30 = vector.extract_strided_slice %26 {offsets = [0, 128], sizes = [8, 128], strides = [1, 1]} : vector<8x384xf32> to vector<8x128xf32>
    %31 = vector.extract_strided_slice %26 {offsets = [0, 256], sizes = [8, 128], strides = [1, 1]} : vector<8x384xf32> to vector<8x128xf32>
    %32 = arith.mulf %30, %2 : vector<8x128xf32>
    %33 = arith.mulf %29, %28 : vector<8x128xf32>
    %34 = arith.addf %32, %33 : vector<8x128xf32>
    %35 = math.tanh %34 : vector<8x128xf32>
    %36 = arith.mulf %31, %35 : vector<8x128xf32>
    %c0_18 = arith.constant 0 : index
    %c0_19 = arith.constant 0 : index
    %37 = vector.load %arg9[%c0_18, %c0_19] : memref<8x128xf32, #tpu.memory_space<vmem>>, vector<8x128xf32>
    tpu.vector_store %arg9[%c0_18, %c0_19], %36 {strides = array<i32>} : memref<8x128xf32, #tpu.memory_space<vmem>>, vector<8x128xf32>,
    %c0_20 = arith.constant 0 : index
    %c0_21 = arith.constant 0 : index
    %38 = vector.load %arg10[%c0_20, %c0_21] : memref<8x128xf32, #tpu.memory_space<vmem>>, vector<8x128xf32>
    tpu.vector_store %arg10[%c0_20, %c0_21], %34 {strides = array<i32>} : memref<8x128xf32, #tpu.memory_space<vmem>>, vector<8x128xf32>,
    return
  }
  func.func @transform_0(%arg0: i32) -> (i32, i32) {
    %c0_i32 = arith.constant 0 : i32
    %c0_i32_0 = arith.constant 0 : i32
    return %arg0, %c0_i32 : i32, i32
  }
  func.func @transform_1(%arg0: i32) -> (i32, i32) {
    %c0_i32 = arith.constant 0 : i32
    %c0_i32_0 = arith.constant 0 : i32
    return %arg0, %c0_i32 : i32, i32
  }
  func.func @transform_2(%arg0: i32) -> (i32, i32) {
    %c0_i32 = arith.constant 0 : i32
    %c0_i32_0 = arith.constant 0 : i32
    return %arg0, %c0_i32 : i32, i32
  }
  func.func @transform_3(%arg0: i32) -> (i32, i32) {
    %c0_i32 = arith.constant 0 : i32
    %c0_i32_0 = arith.constant 0 : i32
    %c0_i32_1 = arith.constant 0 : i32
    return %c0_i32, %c0_i32_0 : i32, i32
  }
  func.func @transform_4(%arg0: i32) -> (i32, i32) {
    %c0_i32 = arith.constant 0 : i32
    %c0_i32_0 = arith.constant 0 : i32
    %c0_i32_1 = arith.constant 0 : i32
    return %c0_i32, %c0_i32_0 : i32, i32
  }
  func.func @transform_5(%arg0: i32) -> (i32, i32) {
    %c0_i32 = arith.constant 0 : i32
    %c0_i32_0 = arith.constant 0 : i32
    %c0_i32_1 = arith.constant 0 : i32
    return %c0_i32, %c0_i32_0 : i32, i32
  }
  func.func @transform_6(%arg0: i32) -> (i32, i32) {
    %c0_i32 = arith.constant 0 : i32
    %c0_i32_0 = arith.constant 0 : i32
    %c0_i32_1 = arith.constant 0 : i32
    return %c0_i32, %c0_i32_0 : i32, i32
  }
  func.func @transform_7(%arg0: i32) -> (i32, i32) {
    %c0_i32 = arith.constant 0 : i32
    %c0_i32_0 = arith.constant 0 : i32
    %c0_i32_1 = arith.constant 0 : i32
    return %c0_i32, %c0_i32_0 : i32, i32
  }
  func.func @transform_8(%arg0: i32) -> (i32, i32) {
    %c0_i32 = arith.constant 0 : i32
    %c0_i32_0 = arith.constant 0 : i32
    return %arg0, %c0_i32 : i32, i32
  }
  func.func @transform_9(%arg0: i32) -> (i32, i32) {
    %c0_i32 = arith.constant 0 : i32
    %c0_i32_0 = arith.constant 0 : i32
    return %arg0, %c0_i32 : i32, i32
  }
}

module attributes {stable_mosaic.version = 11 : i64} {
  func.func @_wm_lstm_kernel(%arg0: i32, %arg1: memref<8x16xf32, #tpu.memory_space<vmem>>, %arg2: memref<8x128xf32, #tpu.memory_space<vmem>>, %arg3: memref<8x128xf32, #tpu.memory_space<vmem>>, %arg4: memref<16x512xbf16, #tpu.memory_space<vmem>>, %arg5: memref<128x512xbf16, #tpu.memory_space<vmem>>, %arg6: memref<128x384xbf16, #tpu.memory_space<vmem>>, %arg7: memref<1x512xf32, #tpu.memory_space<vmem>>, %arg8: memref<1x384xf32, #tpu.memory_space<vmem>>, %arg9: memref<8x128xf32, #tpu.memory_space<vmem>>, %arg10: memref<8x128xf32, #tpu.memory_space<vmem>>) attributes {dimension_semantics = [#tpu.dimension_semantics<parallel>], iteration_bounds = array<i64: 1>, scalar_prefetch = 0 : i64, scratch_operands = 0 : i64, tpu.core_type = #tpu.core_type<tc>, window_params = [{transform_indices = @transform_0, window_bounds = array<i64: 8, 16>}, {transform_indices = @transform_1, window_bounds = array<i64: 8, 128>}, {transform_indices = @transform_2, window_bounds = array<i64: 8, 128>}, {pipeline_mode = #tpu.pipeline_mode<synchronous>, transform_indices = @transform_3, window_bounds = array<i64: 16, 512>}, {pipeline_mode = #tpu.pipeline_mode<synchronous>, transform_indices = @transform_4, window_bounds = array<i64: 128, 512>}, {pipeline_mode = #tpu.pipeline_mode<synchronous>, transform_indices = @transform_5, window_bounds = array<i64: 128, 384>}, {pipeline_mode = #tpu.pipeline_mode<synchronous>, transform_indices = @transform_6, window_bounds = array<i64: 1, 512>}, {pipeline_mode = #tpu.pipeline_mode<synchronous>, transform_indices = @transform_7, window_bounds = array<i64: 1, 384>}, {transform_indices = @transform_8, window_bounds = array<i64: 8, 128>}, {transform_indices = @transform_9, window_bounds = array<i64: 8, 128>}]} {
    %c0 = arith.constant 0 : index
    %c0_0 = arith.constant 0 : index
    %0 = vector.load %arg1[%c0, %c0_0] : memref<8x16xf32, #tpu.memory_space<vmem>>, vector<8x16xf32>
    %c0_1 = arith.constant 0 : index
    %c0_2 = arith.constant 0 : index
    %1 = vector.load %arg2[%c0_1, %c0_2] : memref<8x128xf32, #tpu.memory_space<vmem>>, vector<8x128xf32>
    %c0_3 = arith.constant 0 : index
    %c0_4 = arith.constant 0 : index
    %2 = vector.load %arg3[%c0_3, %c0_4] : memref<8x128xf32, #tpu.memory_space<vmem>>, vector<8x128xf32>
    %3 = arith.truncf %0 : vector<8x16xf32> to vector<8x16xbf16>
    %c0_5 = arith.constant 0 : index
    %c0_6 = arith.constant 0 : index
    %4 = vector.load %arg4[%c0_5, %c0_6] : memref<16x512xbf16, #tpu.memory_space<vmem>>, vector<16x512xbf16>
    %cst = arith.constant dense<0.000000e+00> : vector<8x512xf32>
    %5 = tpu.matmul %3, %4, %cst {dimension_numbers = #tpu.dot_dimension_numbers<[1], [0], [0], [1], [0, 0, 1, 1], [], []>} : vector<8x16xbf16>, vector<16x512xbf16>, vector<8x512xf32> -> vector<8x512xf32>
    %6 = arith.truncf %1 : vector<8x128xf32> to vector<8x128xbf16>
    %c0_7 = arith.constant 0 : index
    %c0_8 = arith.constant 0 : index
    %7 = vector.load %arg5[%c0_7, %c0_8] : memref<128x512xbf16, #tpu.memory_space<vmem>>, vector<128x512xbf16>
    %cst_9 = arith.constant dense<0.000000e+00> : vector<8x512xf32>
    %8 = tpu.matmul %6, %7, %cst_9 {dimension_numbers = #tpu.dot_dimension_numbers<[1], [0], [0], [1], [0, 0, 1, 1], [], []>} : vector<8x128xbf16>, vector<128x512xbf16>, vector<8x512xf32> -> vector<8x512xf32>
    %9 = arith.addf %5, %8 : vector<8x512xf32>
    %c0_10 = arith.constant 0 : index
    %c0_11 = arith.constant 0 : index
    %10 = vector.load %arg7[%c0_10, %c0_11] : memref<1x512xf32, #tpu.memory_space<vmem>>, vector<1x512xf32>
    %11 = vector.broadcast %10 : vector<1x512xf32> to vector<8x512xf32>
    %12 = arith.addf %9, %11 : vector<8x512xf32>
    %13 = arith.truncf %2 : vector<8x128xf32> to vector<8x128xbf16>
    %c0_12 = arith.constant 0 : index
    %c0_13 = arith.constant 0 : index
    %14 = vector.load %arg6[%c0_12, %c0_13] : memref<128x384xbf16, #tpu.memory_space<vmem>>, vector<128x384xbf16>
    %cst_14 = arith.constant dense<0.000000e+00> : vector<8x384xf32>
    %15 = tpu.matmul %13, %14, %cst_14 {dimension_numbers = #tpu.dot_dimension_numbers<[1], [0], [0], [1], [0, 0, 1, 1], [], []>} : vector<8x128xbf16>, vector<128x384xbf16>, vector<8x384xf32> -> vector<8x384xf32>
    %c0_15 = arith.constant 0 : index
    %c0_16 = arith.constant 0 : index
    %16 = vector.load %arg8[%c0_15, %c0_16] : memref<1x384xf32, #tpu.memory_space<vmem>>, vector<1x384xf32>
    %17 = vector.broadcast %16 : vector<1x384xf32> to vector<8x384xf32>
    %18 = arith.addf %15, %17 : vector<8x384xf32>
    %19 = math.tanh %18 : vector<8x384xf32>
    %20 = vector.extract_strided_slice %12 {offsets = [0, 0], sizes = [8, 384], strides = [1, 1]} : vector<8x512xf32> to vector<8x384xf32>
    %21 = arith.addf %20, %19 : vector<8x384xf32>
    %22 = arith.negf %21 : vector<8x384xf32>
    %23 = math.exp %22 : vector<8x384xf32>
    %cst_17 = arith.constant 1.000000e+00 : f32
    %24 = vector.broadcast %cst_17 : f32 to vector<8x384xf32>
    %25 = arith.addf %24, %23 : vector<8x384xf32>
    %26 = arith.divf %24, %25 : vector<8x384xf32>
    %27 = vector.extract_strided_slice %12 {offsets = [0, 384], sizes = [8, 128], strides = [1, 1]} : vector<8x512xf32> to vector<8x128xf32>
    %28 = math.tanh %27 : vector<8x128xf32>
    %29 = vector.extract_strided_slice %26 {offsets = [0, 0], sizes = [8, 128], strides = [1, 1]} : vector<8x384xf32> to vector<8x128xf32>
    %30 = vector.extract_strided_slice %26 {offsets = [0, 128], sizes = [8, 128], strides = [1, 1]} : vector<8x384xf32> to vector<8x128xf32>
    %31 = vector.extract_strided_slice %26 {offsets = [0, 256], sizes = [8, 128], strides = [1, 1]} : vector<8x384xf32> to vector<8x128xf32>
    %32 = arith.mulf %30, %2 : vector<8x128xf32>
    %33 = arith.mulf %29, %28 : vector<8x128xf32>
    %34 = arith.addf %32, %33 : vector<8x128xf32>
    %35 = math.tanh %34 : vector<8x128xf32>
    %36 = arith.mulf %31, %35 : vector<8x128xf32>
    %c0_18 = arith.constant 0 : index
    %c0_19 = arith.constant 0 : index
    %37 = vector.load %arg9[%c0_18, %c0_19] : memref<8x128xf32, #tpu.memory_space<vmem>>, vector<8x128xf32>
    tpu.vector_store %arg9[%c0_18, %c0_19], %36 {strides = array<i32>} : memref<8x128xf32, #tpu.memory_space<vmem>>, vector<8x128xf32>,
    %c0_20 = arith.constant 0 : index
    %c0_21 = arith.constant 0 : index
    %38 = vector.load %arg10[%c0_20, %c0_21] : memref<8x128xf32, #tpu.memory_space<vmem>>, vector<8x128xf32>
    tpu.vector_store %arg10[%c0_20, %c0_21], %34 {strides = array<i32>} : memref<8x128xf32, #tpu.memory_space<vmem>>, vector<8x128xf32>,
    return
  }
  func.func @transform_0(%arg0: i32) -> (i32, i32) {
    %c0_i32 = arith.constant 0 : i32
    %c0_i32_0 = arith.constant 0 : i32
    return %arg0, %c0_i32 : i32, i32
  }
  func.func @transform_1(%arg0: i32) -> (i32, i32) {
    %c0_i32 = arith.constant 0 : i32
    %c0_i32_0 = arith.constant 0 : i32
    return %arg0, %c0_i32 : i32, i32
  }
  func.func @transform_2(%arg0: i32) -> (i32, i32) {
    %c0_i32 = arith.constant 0 : i32
    %c0_i32_0 = arith.constant 0 : i32
    return %arg0, %c0_i32 : i32, i32
  }
  func.func @transform_3(%arg0: i32) -> (i32, i32) {
    %c0_i32 = arith.constant 0 : i32
    %c0_i32_0 = arith.constant 0 : i32
    %c0_i32_1 = arith.constant 0 : i32
    return %c0_i32, %c0_i32_0 : i32, i32
  }
  func.func @transform_4(%arg0: i32) -> (i32, i32) {
    %c0_i32 = arith.constant 0 : i32
    %c0_i32_0 = arith.constant 0 : i32
    %c0_i32_1 = arith.constant 0 : i32
    return %c0_i32, %c0_i32_0 : i32, i32
  }
  func.func @transform_5(%arg0: i32) -> (i32, i32) {
    %c0_i32 = arith.constant 0 : i32
    %c0_i32_0 = arith.constant 0 : i32
    %c0_i32_1 = arith.constant 0 : i32
    return %c0_i32, %c0_i32_0 : i32, i32
  }
  func.func @transform_6(%arg0: i32) -> (i32, i32) {
    %c0_i32 = arith.constant 0 : i32
    %c0_i32_0 = arith.constant 0 : i32
    %c0_i32_1 = arith.constant 0 : i32
    return %c0_i32, %c0_i32_0 : i32, i32
  }
  func.func @transform_7(%arg0: i32) -> (i32, i32) {
    %c0_i32 = arith.constant 0 : i32
    %c0_i32_0 = arith.constant 0 : i32
    %c0_i32_1 = arith.constant 0 : i32
    return %c0_i32, %c0_i32_0 : i32, i32
  }
  func.func @transform_8(%arg0: i32) -> (i32, i32) {
    %c0_i32 = arith.constant 0 : i32
    %c0_i32_0 = arith.constant 0 : i32
    return %arg0, %c0_i32 : i32, i32
  }
  func.func @transform_9(%arg0: i32) -> (i32, i32) {
    %c0_i32 = arith.constant 0 : i32
    %c0_i32_0 = arith.constant 0 : i32
    return %arg0, %c0_i32 : i32, i32
  }
}

</mosaic_0001>

<bundles_post_ra>
// kernel: working_memory_lstm_cell.1
= control target key start
LH: loop header
LB: loop body
LE: loop exit
PB: predicated region body
PF: predicated region fallthrough
CT: control target
= control target key end

     0   :  { %15 = vsyncpa [#allocation3], 0  ;;  %s1172_s0 = inlined_call_operand.vmem [shape: f32[8,16], index: 0, kind: input, shape index: {}]   ;;  %s1173_s1 = inlined_call_operand.vmem [shape: f32[8,128], index: 1, kind: input, shape index: {}, may-alias: {1,8}]   ;;  %s1174_s2 = inlined_call_operand.vmem [shape: f32[8,128], index: 2, kind: input, shape index: {}, may-alias: {2,9}]   ;;  %s1175_s3 = inlined_call_operand.vmem [shape: bf16[16,512], index: 3, kind: input, shape index: {}]   ;;  %s1176_s4 = inlined_call_operand.hbm [shape: bf16[128,512], index: 4, kind: input, shape index: {}]   ;;  %s1177_s5 = inlined_call_operand.hbm [shape: bf16[128,384], index: 5, kind: input, shape index: {}]   ;;  %s1178_s6 = inlined_call_operand.vmem [shape: f32[1,512], index: 6, kind: input, shape index: {}]   ;;  %s1179_s7 = inlined_call_operand.hbm [shape: f32[1,384], index: 7, kind: input, shape index: {}]   ;;  %s1180_s8 = inlined_call_operand.vmem [shape: f32[8,128], index: 8, kind: output, shape index: {0}, may-alias: {1,8}]   ;;  %s1181_s9 = inlined_call_operand.vmem [shape: f32[8,128], index: 9, kind: output, shape index: {1}, may-alias: {2,9}]  }
   0x1   :  { %16 = vsyncpa [#allocation5], 0  ;;  %s1063_s30 = smov [#allocation4]  }
   0x2   :  { %s42_s10 = sshll.u32 %s1063_s30, 4  ;;  %s43_s10 = int_to_ptr.vmem [resolvable:$true] %s42_s10 }
   0x3   :  { %s1007_s11 = scalar_lea.vmem %s43_s10, 3072  ;;  %p1012_p1 = scmp.lt.s32.totalorder %s43_s10, %s43_s10 }
   0x4   :  { %p1008_p0 = scmp.ne.s32.totalorder %s43_s10, %s1007_s11  ;;  %p1013_p2 = scmp.lt.s32.totalorder %s1007_s11, %s1007_s11 }
   0x6   :  { %p1014_p3 = por %p1013_p2, %p1012_p1 }
   0x8   :  { %p1015_p4 = pnand %p1014_p3, %p1008_p0 }
   0xa   :  { %1018 = shalt.err (!%p1015_p4)
}
   0xb   :  { %s1064_s12 = smov 192   ;;  %s1065_s13 = smov 12  }
   0xc   :  { %48 = dma.hbm_to_vmem [thread:$0]  %s1177_s5, 3072, %s43_s10, [#allocation5], %s1064_s12, %s1064_s12, %s1065_s13  }
   0xd   :  { %s1066_s16 = smov [#allocation2]  }
   0xe   :  { %s30_s17 = sshll.u32 %s1066_s16, 4  ;;  %s31_s17 = int_to_ptr.vmem [resolvable:$true] %s30_s17 }
   0xf   :  { %s1027_s18 = scalar_lea.vmem %s31_s17, 4096  ;;  %p1032_p6 = scmp.lt.s32.totalorder %s31_s17, %s31_s17 }
  0x10   :  { %p1028_p5 = scmp.ne.s32.totalorder %s31_s17, %s1027_s18  ;;  %p1033_p7 = scmp.lt.s32.totalorder %s1027_s18, %s1027_s18 }
  0x12   :  { %p1034_p8 = por %p1033_p7, %p1032_p6 }
  0x14   :  { %p1035_p9 = pnand %p1034_p8, %p1028_p5 }
  0x16   :  { %1038 = shalt.err (!%p1035_p9)
}
  0x17   :  { %s1067_s19 = smov 256   ;;  %s1068_s20 = smov 16  }
  0x18   :  { %36 = dma.hbm_to_vmem [thread:$0]  %s1176_s4, 4096, %s31_s17, [#allocation3], %s1067_s19, %s1067_s19, %s1068_s20  }
  0x19   :  { %s1069_s23 = smov [#allocation6]  }
  0x1a   :  { %s57_s24 = sshll.u32 %s1069_s23, 4  ;;  %s58_s24 = int_to_ptr.vmem [resolvable:$true] %s57_s24 }
  0x1b   :  { %s1047_s5 = scalar_lea.vmem %s58_s24, 48  ;;  %s1051_s25 = scalar_lea.vmem %s58_s24, 64 }
  0x1c   :  { %p1048_p10 = scmp.ne.s32.totalorder %s58_s24, %s1047_s5  ;;  %p1052_p11 = scmp.lt.s32.totalorder %s58_s24, %s58_s24 }
  0x1d   :  { %p1053_p12 = scmp.lt.s32.totalorder %s1051_s25, %s1047_s5 }
  0x1f   :  { %p1054_p13 = por %p1053_p12, %p1052_p11 }
  0x21   :  { %p1055_p0 = pnand %p1054_p13, %p1048_p10 }
  0x23   :  { %1058 = shalt.err (!%p1055_p0)
}
  0x24   :  { %60 = dma.hbm_to_vmem [thread:$0]  %s1179_s7, 48, %s58_s24, [#allocation5]  }
  0x25   :  { %1059 = dma.done.wait [#allocation3], 4096  }
  0x26   :  { %1060 = vsyncadd [#allocation3], 4294963200 }
  0x27   :  { %1061 = dma.done.wait [#allocation5], 3120  }
  0x28   :  { %1062 = vsyncadd [#allocation5], 4294964176  ;;  %v1070_v0 = vmov 0   ;;  %v891_v1 = vld [vmem:[#allocation2 + $0xe4] ss:$16 sps:$4 sm:$0xff]   ;;  %v1071_v41 = vmov 0.0  }
  0x29   :  { %304 = vmatprep.mubr.bf16.mxu0 %v1070_v0  ;;  %345 = vmatprep.mubr.bf16.mxu1 %v1070_v0  ;;  %v893_v2 = vld [vmem:[#allocation2 + $0xec] ss:$16 sps:$4 sm:$0xff]   ;;  %v895_v3 = vld [vmem:[#allocation2 + $0xe0] ss:$16 sps:$4 sm:$0xff]   ;;  %v896_v4 = vld [vmem:[#allocation2 + $0xe8] ss:$16 sps:$4 sm:$0xff]  }
  0x2a   :  { %272 = vmatprep.subr.bf16.mxu0 %v891_v1  ;;  %313 = vmatprep.subr.bf16.mxu1 %v893_v2  ;;  %v897_v5 = vld [vmem:[#allocation2 + $0xc4] ss:$16 sps:$4 sm:$0xff]   ;;  %v899_v6 = vld [vmem:[#allocation2 + $0xcc] ss:$16 sps:$4 sm:$0xff]   ;;  %v901_v7 = vld [vmem:[#allocation2 + $0xc0] ss:$16 sps:$4 sm:$0xff]  }
  0x2b   :  { %273 = vmatpush1.bf16.msra.mxu0 %v895_v3  ;;  %314 = vmatpush1.bf16.msra.mxu1 %v896_v4  ;;  %v902_v8 = vld [vmem:[#allocation2 + $0xc8] ss:$16 sps:$4 sm:$0xff]   ;;  %v903_v9 = vld [vmem:[#allocation2 + $0xa4] ss:$16 sps:$4 sm:$0xff]   ;;  %v905_v10 = vld [vmem:[#allocation2 + $0xac] ss:$16 sps:$4 sm:$0xff]  }
  0x2c   :  { %274 = vmatprep.subr.bf16.mxu0 %v897_v5  ;;  %315 = vmatprep.subr.bf16.mxu1 %v899_v6  ;;  %v907_v11 = vld [vmem:[#allocation2 + $0xa0] ss:$16 sps:$4 sm:$0xff]   ;;  %v908_v12 = vld [vmem:[#allocation2 + $0xa8] ss:$16 sps:$4 sm:$0xff]   ;;  %v909_v13 = vld [vmem:[#allocation2 + $0x84] ss:$16 sps:$4 sm:$0xff]  }
  0x2d   :  { %v911_v14 = vld [vmem:[#allocation2 + $0x8c] ss:$16 sps:$4 sm:$0xff]   ;;  %v913_v15 = vld [vmem:[#allocation2 + $0x80] ss:$16 sps:$4 sm:$0xff]   ;;  %v914_v16 = vld [vmem:[#allocation2 + $0x88] ss:$16 sps:$4 sm:$0xff]  }
  0x2e   :  { %v915_v17 = vld [vmem:[#allocation2 + $0x64] ss:$16 sps:$4 sm:$0xff]   ;;  %v917_v18 = vld [vmem:[#allocation2 + $0x6c] ss:$16 sps:$4 sm:$0xff]   ;;  %v919_v19 = vld [vmem:[#allocation2 + $0x60] ss:$16 sps:$4 sm:$0xff]  }
  0x2f   :  { %275 = vmatpush1.bf16.msra.mxu0 %v901_v7  ;;  %316 = vmatpush1.bf16.msra.mxu1 %v902_v8  ;;  %v920_v20 = vld [vmem:[#allocation2 + $0x68] ss:$16 sps:$4 sm:$0xff]   ;;  %v921_v21 = vld [vmem:[#allocation2 + $0x44] ss:$16 sps:$4 sm:$0xff]   ;;  %v923_v22 = vld [vmem:[#allocation2 + $0x4c] ss:$16 sps:$4 sm:$0xff]  }
  0x30   :  { %276 = vmatprep.subr.bf16.mxu0 %v903_v9  ;;  %317 = vmatprep.subr.bf16.mxu1 %v905_v10  ;;  %v925_v23 = vld [vmem:[#allocation2 + $0x40] ss:$16 sps:$4 sm:$0xff]   ;;  %v926_v24 = vld [vmem:[#allocation2 + $0x48] ss:$16 sps:$4 sm:$0xff]   ;;  %v927_v25 = vld [vmem:[#allocation2 + $0x24] ss:$16 sps:$4 sm:$0xff]  }
  0x31   :  { %v929_v26 = vld [vmem:[#allocation2 + $0x2c] ss:$16 sps:$4 sm:$0xff]   ;;  %v931_v27 = vld [vmem:[#allocation2 + $0x20] ss:$16 sps:$4 sm:$0xff]   ;;  %v932_v28 = vld [vmem:[#allocation2 + $0x28] ss:$16 sps:$4 sm:$0xff]  }
  0x32   :  { %v933_v29 = vld [vmem:[#allocation2 + $0x4] ss:$16 sps:$4 sm:$0xff]   ;;  %v935_v30 = vld [vmem:[#allocation2 + $0xc] ss:$16 sps:$4 sm:$0xff]   ;;  %v937_v31 = vld [vmem:[#allocation2] ss:$16 sps:$4 sm:$0xff]  }
  0x33   :  { %277 = vmatpush1.bf16.msra.mxu0 %v907_v11  ;;  %318 = vmatpush1.bf16.msra.mxu1 %v908_v12  ;;  %v938_v32 = vld [vmem:[#allocation2 + $0x8] ss:$16 sps:$4 sm:$0xff]   ;;  %v72_v33 = vld [vmem:[%s1173_s1] sm:$0xff]  ;;  %v944_v35 = vld [vmem:[%s1175_s3 + $0xc] ss:$16 sps:$4 sm:$0xff]   ;;  %vm374_vm0 = vcmask 130048  }
  0x34   :  { %278 = vmatprep.subr.bf16.mxu0 %v909_v13  ;;  %319 = vmatprep.subr.bf16.mxu1 %v911_v14  ;;  %v941_v34 = vld [vmem:[%s1175_s3 + $0x4] ss:$16 sps:$4 sm:$0xff]   ;;  %v79_v36 = vpack.c.bf16 %v72_v33, %v72_v33  ;;  %v939_v37 = vld [vmem:[%s1175_s3] ss:$16 sps:$4 sm:$0xff]   ;;  %v942_v38 = vld [vmem:[%s1175_s3 + $0x8] ss:$16 sps:$4 sm:$0xff]  }
  0x35   :  { %v947_v39 = vld [vmem:[#allocation4 + $0xac] ss:$12 sps:$4 sm:$0xff]   ;;  %v71_v40 = vld [vmem:[%s1172_s0] sm:$0xff]  ;;  %v945_v42 = vld [vmem:[#allocation4 + $0xa8] ss:$12 sps:$4 sm:$0xff]   ;;  %vm1072_vm1 = vmmov 0  }
  0x36   :  { %v74_v43 = vpack.c.bf16 %v71_v40, %v71_v40  ;;  %v948_v44 = vld [vmem:[#allocation4 + $0xb0] ss:$12 sps:$4 sm:$0xff]   ;;  %v951_v45 = vld [vmem:[#allocation4 + $0x94] ss:$12 sps:$4 sm:$0xff]   ;;  %v952_v47 = vld [vmem:[#allocation4 + $0x98] ss:$12 sps:$4 sm:$0xff]  }
  0x37   :  { %279 = vmatpush1.bf16.msra.mxu0 %v913_v15  ;;  %320 = vmatpush1.bf16.msra.mxu1 %v914_v16  ;;  %v949_v46 = vld [vmem:[#allocation4 + $0x90] ss:$12 sps:$4 sm:$0xff]   ;;  %v953_v49 = vld [vmem:[#allocation4 + $0x78] ss:$12 sps:$4 sm:$0xff]   ;;  %v956_v50 = vld [vmem:[#allocation4 + $0x80] ss:$12 sps:$4 sm:$0xff]  }
  0x38   :  { %280 = vmatprep.subr.bf16.mxu0 %v915_v17  ;;  %321 = vmatprep.subr.bf16.mxu1 %v917_v18  ;;  %v955_v48 = vld [vmem:[#allocation4 + $0x7c] ss:$12 sps:$4 sm:$0xff]   ;;  %v959_v51 = vld [vmem:[#allocation4 + $0x64] ss:$12 sps:$4 sm:$0xff]   ;;  %v957_v52 = vld [vmem:[#allocation4 + $0x60] ss:$12 sps:$4 sm:$0xff]  }
  0x39   :  { %v960_v53 = vld [vmem:[#allocation4 + $0x68] ss:$12 sps:$4 sm:$0xff]   ;;  %v963_v54 = vld [vmem:[#allocation4 + $0x4c] ss:$12 sps:$4 sm:$0xff]   ;;  %v964_v56 = vld [vmem:[#allocation4 + $0x50] ss:$12 sps:$4 sm:$0xff]  }
  0x3a   :  { %v961_v55 = vld [vmem:[#allocation4 + $0x48] ss:$12 sps:$4 sm:$0xff]   ;;  %v965_v58 = vld [vmem:[#allocation4 + $0x30] ss:$12 sps:$4 sm:$0xff]   ;;  %v968_v59 = vld [vmem:[#allocation4 + $0x38] ss:$12 sps:$4 sm:$0xff]  }
  0x3b   :  { %281 = vmatpush1.bf16.msra.mxu0 %v919_v19  ;;  %322 = vmatpush1.bf16.msra.mxu1 %v920_v20  ;;  %v967_v57 = vld [vmem:[#allocation4 + $0x34] ss:$12 sps:$4 sm:$0xff]   ;;  %v971_v60 = vld [vmem:[#allocation4 + $0x1c] ss:$12 sps:$4 sm:$0xff]   ;;  %v969_v61 = vld [vmem:[#allocation4 + $0x18] ss:$12 sps:$4 sm:$0xff]  }
  0x3c   :  { %282 = vmatprep.subr.bf16.mxu0 %v921_v21  ;;  %323 = vmatprep.subr.bf16.mxu1 %v923_v22  ;;  %v972_v62 = vld [vmem:[#allocation4 + $0x20] ss:$12 sps:$4 sm:$0xff]   ;;  %v975_v63 = vld [vmem:[#allocation4 + $0x4] ss:$12 sps:$4 sm:$0xff]   ;;  %v976_v1 = vld [vmem:[#allocation4 + $0x8] ss:$12 sps:$4 sm:$0xff]   ;;  %v462_v22 = vlaneseq }
  0x3d   :  { %v1158_v2 = vld [vmem:[%s1174_s2] sm:$0xff] }
  0x3e   :  { %v486_v3 = vpack.c.bf16 %v1158_v2, %v1158_v2 }
  0x3f   :  { %283 = vmatpush1.bf16.msra.mxu0 %v925_v23  ;;  %324 = vmatpush1.bf16.msra.mxu1 %v926_v24  ;;  %v463_v23 = vshrl.u32 %v462_v22, 7  ;;  %v519_v24 = vld [vmem:[#allocation6] sm:$0x7] }
  0x40   :  { %284 = vmatprep.subr.bf16.mxu0 %v927_v25  ;;  %325 = vmatprep.subr.bf16.mxu1 %v929_v26 }
  0x41   :  { %v464_v25 = vsub.s32 0, %v463_v23  ;;  %v468_v26 = vsub.s32 1, %v463_v23 }
  0x43   :  { %285 = vmatpush1.bf16.msra.mxu0 %v931_v27  ;;  %326 = vmatpush1.bf16.msra.mxu1 %v932_v28  ;;  %v524_v27 = vrot.slane %v519_v24, %v464_v25  ;;  %v528_v28 = vrot.slane %v519_v24, %v468_v26 }
  0x44   :  { %286 = vmatprep.subr.bf16.mxu0 %v933_v29  ;;  %327 = vmatprep.subr.bf16.mxu1 %v935_v30 }
  0x47   :  { %287 = vmatpush1.bf16.msra.mxu0 %v937_v31  ;;  %328 = vmatpush1.bf16.msra.mxu1 %v938_v32  ;;  %v472_v32 = vsub.s32 2, %v463_v23 }
  0x48   :  { %392 = vmatprep.subr.bf16.mxu0 %v941_v34  ;;  %433 = vmatprep.subr.bf16.mxu1 %v944_v35 }
  0x4a   :  { %305 = vmatmul.mubr.bf16.vlgmr.msra.gmra.mxu0 %v79_v36  ;;  %346 = vmatmul.mubr.bf16.vlgmr.msra.gmra.mxu1 %v79_v36  ;;  %v532_v36 = vrot.slane %v519_v24, %v472_v32 }
  0x4b   :  { %393 = vmatpush1.bf16.msra.mxu0 %v939_v37  ;;  %434 = vmatpush1.bf16.msra.mxu1 %v942_v38 }
  0x4c   :  { %410 = vmatprep.mubr.bf16.mxu0 %v1070_v0  ;;  %451 = vmatprep.mubr.bf16.mxu1 %v1070_v0 }
  0x4d   :  { %664 = vmatprep.subr.bf16.mxu0 %v947_v39  ;;  %861 = vmatprep.subr.bf16.mxu1 %v1071_v41 }
  0x52   :  { %823 = vmatmul.mubr.msk.bf16.vlgmr.msra.gmra.mxu0 %vm374_vm0, %v74_v43  ;;  %824 = vmatmul.mubr.msk.bf16.vlgmr.msra.gmra.mxu1 %vm374_vm0, %v74_v43 }
  0x53   :  { %665 = vmatpush1.bf16.msra.mxu0 %v945_v42  ;;  %862 = vmatpush3.bf16.msra.mxu1 %v948_v44 }
  0x54   :  { %666 = vmatprep.subr.bf16.mxu0 %v951_v45  ;;  %863 = vmatprep.subr.bf16.mxu1 %v1071_v41 }
  0x55   :  { %696 = vmatprep.mubr.bf16.mxu0 %v1070_v0  ;;  %877 = vmatprep.mubr.msk.bf16.mxu1 %vm1072_vm1, %v1071_v41  ;;  %v973_v0 = vld [vmem:[#allocation4] ss:$12 sps:$4 sm:$0xff]  }
  0x57   :  { %667 = vmatpush1.bf16.msra.mxu0 %v949_v46  ;;  %864 = vmatpush3.bf16.msra.mxu1 %v952_v47 }
  0x58   :  { %668 = vmatprep.subr.bf16.mxu0 %v955_v48  ;;  %865 = vmatprep.subr.bf16.mxu1 %v1071_v41 }
  0x5b   :  { %669 = vmatpush1.bf16.msra.mxu0 %v953_v49  ;;  %866 = vmatpush3.bf16.msra.mxu1 %v956_v50 }
  0x5c   :  { %670 = vmatprep.subr.bf16.mxu0 %v959_v51  ;;  %867 = vmatprep.subr.bf16.mxu1 %v1071_v41 }
  0x5f   :  { %671 = vmatpush1.bf16.msra.mxu0 %v957_v52  ;;  %868 = vmatpush3.bf16.msra.mxu1 %v960_v53 }
  0x60   :  { %672 = vmatprep.subr.bf16.mxu0 %v963_v54  ;;  %869 = vmatprep.subr.bf16.mxu1 %v1071_v41 }
  0x63   :  { %673 = vmatpush1.bf16.msra.mxu0 %v961_v55  ;;  %870 = vmatpush3.bf16.msra.mxu1 %v964_v56 }
  0x64   :  { %674 = vmatprep.subr.bf16.mxu0 %v967_v57  ;;  %871 = vmatprep.subr.bf16.mxu1 %v1071_v41 }
  0x67   :  { %675 = vmatpush1.bf16.msra.mxu0 %v965_v58  ;;  %872 = vmatpush3.bf16.msra.mxu1 %v968_v59  ;;  %v476_v58 = vsub.s32 3, %v463_v23 }
  0x68   :  { %676 = vmatprep.subr.bf16.mxu0 %v971_v60  ;;  %873 = vmatprep.subr.bf16.mxu1 %v1071_v41 }
  0x6b   :  { %677 = vmatpush1.bf16.msra.mxu0 %v969_v61  ;;  %874 = vmatpush3.bf16.msra.mxu1 %v972_v62 }
  0x6c   :  { %678 = vmatprep.subr.bf16.mxu0 %v975_v63  ;;  %875 = vmatprep.subr.bf16.mxu1 %v1071_v41  ;;  %v460_v41 = vld [vmem:[%s1178_s6] sm:$0xf] }
  0x6d   :  { %v465_v44 = vrot.slane %v460_v41, %v464_v25  ;;  %v469_v46 = vrot.slane %v460_v41, %v468_v26  ;;  %v473_v55 = vrot.slane %v460_v41, %v472_v32  ;;  %v477_v60 = vrot.slane %v460_v41, %v476_v58 }
  0x6f   :  { %679 = vmatpush1.bf16.msra.mxu0 %v973_v0  ;;  %876 = vmatpush3.bf16.msra.mxu1 %v976_v1 }
  0x72   :  { %697 = vmatmul.mubr.bf16.vlgmr.msra.gmra.mxu0 %v486_v3  ;;  %878 = vmatmul.mubr.bf16.vlgmr.msra.gmra.mxu1 %v486_v3 }
 0x10a   :  { %v306_v4 = vpop.f32.mrf.mxu0  ;;  %v347_v5 = vpop.f32.mrf.mxu1 }
 0x10c   :  { %v308_v6 = vpop.f32.mrf.mxu0  ;;  %v349_v7 = vpop.f32.mrf.mxu1 }
 0x10e   :  { %v310_v8 = vpop.f32.mrf.mxu0  ;;  %v351_v9 = vpop.f32.mrf.mxu1 }
 0x110   :  { %v311_v10 = vpop.f32.mrf.mxu0  ;;  %v352_v11 = vpop.f32.mrf.mxu1 }
 0x112   :  { %v412_v12 = vpop.f32.mrf.mxu0  ;;  %v453_v13 = vpop.f32.mrf.mxu1 }
 0x113   :  { %v454_v14 = vadd.f32 %v453_v13, %v347_v5  ;;  %v413_v43 = vadd.f32 %v412_v12, %v306_v4 }
 0x114   :  { %v414_v15 = vpop.f32.mrf.mxu0  ;;  %v455_v16 = vpop.f32.mrf.mxu1 }
 0x115   :  { %v456_v17 = vadd.f32 %v455_v16, %v349_v7  ;;  %v415_v45 = vadd.f32 %v414_v15, %v308_v6  ;;  %v482_v47 = vadd.f32 %v465_v44, %v413_v43  ;;  %v484_v57 = vadd.f32 %v473_v55, %v454_v14 }
 0x116   :  { %v416_v18 = vpop.f32.mrf.mxu0  ;;  %v457_v19 = vpop.f32.mrf.mxu1 }
 0x117   :  { %v483_v49 = vadd.f32 %v469_v46, %v415_v45  ;;  %v485_v63 = vadd.f32 %v477_v60, %v456_v17 }
 0x118   :  { %v417_v20 = vpop.f32.mrf.mxu0  ;;  %v458_v21 = vpop.f32.mrf.mxu1 }
 0x132   :  { %v698_v29 = vpop.f32.mrf.mxu0  ;;  %v739_v30 = vpop.f32.mrf.mxu1 }
 0x133   :  { %v699_v31 = vadd.f32 %v698_v29, %v524_v27  ;;  %v740_v42 = vadd.f32 %v739_v30, %v532_v36 }
 0x134   :  { %v700_v33 = vpop.f32.mrf.mxu0  ;;  %v879_v34 = vpop.f32.mrf.mxu1 }
 0x135   :  { %977 = vtanh.f32 %v699_v31  ;;  %v701_v35 = vadd.f32 %v700_v33, %v528_v28 }
 0x136   :  { %v702_v37 = vpop.f32.mrf.mxu0  ;;  %v742_v38 = vpop.f32.mrf.mxu1 }
 0x137   :  { %979 = vtanh.f32 %v701_v35 }
 0x138   :  { %v703_v39 = vpop.f32.mrf.mxu0  ;;  %v880_v40 = vpop.f32.mrf.mxu1  ;;  %981 = vtanh.f32 %v740_v42 }
 0x142   :  { %v978_v48 = vpop.eup %977 }
 0x143   :  { %v748_v50 = vadd.f32 %v978_v48, %v482_v47 }
 0x144   :  { %v980_v51 = vpop.eup %979 }
 0x145   :  { %v849_v52 = vmul.f32 -1.442695, %v748_v50  ;;  %v749_v53 = vadd.f32 %v980_v51, %v483_v49  ;;  %v982_v56 = vpop.eup %981 }
 0x146   :  { %v750_v59 = vadd.f32 %v982_v56, %v484_v57 }
 0x147   :  { %983 = vpow2.f32 %v849_v52  ;;  %v850_v54 = vmul.f32 -1.442695, %v749_v53 }
 0x148   :  { %v851_v61 = vmul.f32 -1.442695, %v750_v59 }
 0x149   :  { %985 = vpow2.f32 %v850_v54 }
 0x14a   :  { %987 = vpow2.f32 %v851_v61 }
 0x154   :  { %v984_v62 = vpop.eup %983 }
 0x155   :  { %v760_v0 = vadd.f32 1.0, %v984_v62 }
 0x156   :  { %v986_v1 = vpop.eup %985 }
 0x157   :  { %989 = vrcp.f32 %v760_v0  ;;  %v761_v3 = vadd.f32 1.0, %v986_v1  ;;  %v988_v4 = vpop.eup %987 }
 0x158   :  { %991 = vtanh.f32 %v485_v63  ;;  %v762_v8 = vadd.f32 1.0, %v988_v4 }
 0x159   :  { %993 = vrcp.f32 %v761_v3 }
 0x15a   :  { %995 = vrcp.f32 %v762_v8 }
 0x164   :  { %v990_v5 = vpop.eup %989 }
 0x165   :  { %v992_v6 = vpop.eup %991 }
 0x166   :  { %v994_v7 = vpop.eup %993  ;;  %v771_v9 = vmul.f32 %v992_v6, %v990_v5 }
 0x167   :  { %v770_v10 = vmul.f32 %v994_v7, %v1158_v2  ;;  %v996_v12 = vpop.eup %995 }
 0x169   :  { %v772_v11 = vadd.f32 %v771_v9, %v770_v10 }
 0x16b   :  { %997 = vtanh.f32 %v772_v11  ;;  %776 = vst [vmem:[%s1181_s9] sm:$0xff] %v772_v11 }
 0x178   :  { %v998_v13 = vpop.eup %997 }
 0x179   :  { %v774_v14 = vmul.f32 %v998_v13, %v996_v12 }
 0x17b   :  { %775 = vst [vmem:[%s1180_s8] sm:$0xff] %v774_v14 }
 0x17c   :  { %785 = vsyncpa [#allocation3], 1 }
 0x17d   :  { %786 = vsyncpa [#allocation5], 1 }

// kernel: working_memory_lstm_cell.1
= control target key start
LH: loop header
LB: loop body
LE: loop exit
PB: predicated region body
PF: predicated region fallthrough
CT: control target
= control target key end

     0   :  { %15 = vsyncpa [#allocation3], 0  ;;  %s1172_s0 = inlined_call_operand.vmem [shape: f32[8,16], index: 0, kind: input, shape index: {}]   ;;  %s1173_s1 = inlined_call_operand.vmem [shape: f32[8,128], index: 1, kind: input, shape index: {}, may-alias: {1,8}]   ;;  %s1174_s2 = inlined_call_operand.vmem [shape: f32[8,128], index: 2, kind: input, shape index: {}, may-alias: {2,9}]   ;;  %s1175_s3 = inlined_call_operand.vmem [shape: bf16[16,512], index: 3, kind: input, shape index: {}]   ;;  %s1176_s4 = inlined_call_operand.hbm [shape: bf16[128,512], index: 4, kind: input, shape index: {}]   ;;  %s1177_s5 = inlined_call_operand.hbm [shape: bf16[128,384], index: 5, kind: input, shape index: {}]   ;;  %s1178_s6 = inlined_call_operand.vmem [shape: f32[1,512], index: 6, kind: input, shape index: {}]   ;;  %s1179_s7 = inlined_call_operand.hbm [shape: f32[1,384], index: 7, kind: input, shape index: {}]   ;;  %s1180_s8 = inlined_call_operand.vmem [shape: f32[8,128], index: 8, kind: output, shape index: {0}, may-alias: {1,8}]   ;;  %s1181_s9 = inlined_call_operand.vmem [shape: f32[8,128], index: 9, kind: output, shape index: {1}, may-alias: {2,9}]  }
   0x1   :  { %16 = vsyncpa [#allocation5], 0  ;;  %s1063_s30 = smov [#allocation4]  }
   0x2   :  { %s42_s10 = sshll.u32 %s1063_s30, 4  ;;  %s43_s10 = int_to_ptr.vmem [resolvable:$true] %s42_s10 }
   0x3   :  { %s1007_s11 = scalar_lea.vmem %s43_s10, 3072  ;;  %p1012_p1 = scmp.lt.s32.totalorder %s43_s10, %s43_s10 }
   0x4   :  { %p1008_p0 = scmp.ne.s32.totalorder %s43_s10, %s1007_s11  ;;  %p1013_p2 = scmp.lt.s32.totalorder %s1007_s11, %s1007_s11 }
   0x6   :  { %p1014_p3 = por %p1013_p2, %p1012_p1 }
   0x8   :  { %p1015_p4 = pnand %p1014_p3, %p1008_p0 }
   0xa   :  { %1018 = shalt.err (!%p1015_p4)
}
   0xb   :  { %s1064_s12 = smov 192   ;;  %s1065_s13 = smov 12  }
   0xc   :  { %48 = dma.hbm_to_vmem [thread:$0]  %s1177_s5, 3072, %s43_s10, [#allocation5], %s1064_s12, %s1064_s12, %s1065_s13  }
   0xd   :  { %s1066_s16 = smov [#allocation2]  }
   0xe   :  { %s30_s17 = sshll.u32 %s1066_s16, 4  ;;  %s31_s17 = int_to_ptr.vmem [resolvable:$true] %s30_s17 }
   0xf   :  { %s1027_s18 = scalar_lea.vmem %s31_s17, 4096  ;;  %p1032_p6 = scmp.lt.s32.totalorder %s31_s17, %s31_s17 }
  0x10   :  { %p1028_p5 = scmp.ne.s32.totalorder %s31_s17, %s1027_s18  ;;  %p1033_p7 = scmp.lt.s32.totalorder %s1027_s18, %s1027_s18 }
  0x12   :  { %p1034_p8 = por %p1033_p7, %p1032_p6 }
  0x14   :  { %p1035_p9 = pnand %p1034_p8, %p1028_p5 }
  0x16   :  { %1038 = shalt.err (!%p1035_p9)
}
  0x17   :  { %s1067_s19 = smov 256   ;;  %s1068_s20 = smov 16  }
  0x18   :  { %36 = dma.hbm_to_vmem [thread:$0]  %s1176_s4, 4096, %s31_s17, [#allocation3], %s1067_s19, %s1067_s19, %s1068_s20  }
  0x19   :  { %s1069_s23 = smov [#allocation6]  }
  0x1a   :  { %s57_s24 = sshll.u32 %s1069_s23, 4  ;;  %s58_s24 = int_to_ptr.vmem [resolvable:$true] %s57_s24 }
  0x1b   :  { %s1047_s5 = scalar_lea.vmem %s58_s24, 48  ;;  %s1051_s25 = scalar_lea.vmem %s58_s24, 64 }
  0x1c   :  { %p1048_p10 = scmp.ne.s32.totalorder %s58_s24, %s1047_s5  ;;  %p1052_p11 = scmp.lt.s32.totalorder %s58_s24, %s58_s24 }
  0x1d   :  { %p1053_p12 = scmp.lt.s32.totalorder %s1051_s25, %s1047_s5 }
  0x1f   :  { %p1054_p13 = por %p1053_p12, %p1052_p11 }
  0x21   :  { %p1055_p0 = pnand %p1054_p13, %p1048_p10 }
  0x23   :  { %1058 = shalt.err (!%p1055_p0)
}
  0x24   :  { %60 = dma.hbm_to_vmem [thread:$0]  %s1179_s7, 48, %s58_s24, [#allocation5]  }
  0x25   :  { %1059 = dma.done.wait [#allocation3], 4096  }
  0x26   :  { %1060 = vsyncadd [#allocation3], 4294963200 }
  0x27   :  { %1061 = dma.done.wait [#allocation5], 3120  }
  0x28   :  { %1062 = vsyncadd [#allocation5], 4294964176  ;;  %v1070_v0 = vmov 0   ;;  %v891_v1 = vld [vmem:[#allocation2 + $0xe4] ss:$16 sps:$4 sm:$0xff]   ;;  %v1071_v41 = vmov 0.0  }
  0x29   :  { %304 = vmatprep.mubr.bf16.mxu0 %v1070_v0  ;;  %345 = vmatprep.mubr.bf16.mxu1 %v1070_v0  ;;  %v893_v2 = vld [vmem:[#allocation2 + $0xec] ss:$16 sps:$4 sm:$0xff]   ;;  %v895_v3 = vld [vmem:[#allocation2 + $0xe0] ss:$16 sps:$4 sm:$0xff]   ;;  %v896_v4 = vld [vmem:[#allocation2 + $0xe8] ss:$16 sps:$4 sm:$0xff]  }
  0x2a   :  { %272 = vmatprep.subr.bf16.mxu0 %v891_v1  ;;  %313 = vmatprep.subr.bf16.mxu1 %v893_v2  ;;  %v897_v5 = vld [vmem:[#allocation2 + $0xc4] ss:$16 sps:$4 sm:$0xff]   ;;  %v899_v6 = vld [vmem:[#allocation2 + $0xcc] ss:$16 sps:$4 sm:$0xff]   ;;  %v901_v7 = vld [vmem:[#allocation2 + $0xc0] ss:$16 sps:$4 sm:$0xff]  }
  0x2b   :  { %273 = vmatpush1.bf16.msra.mxu0 %v895_v3  ;;  %314 = vmatpush1.bf16.msra.mxu1 %v896_v4  ;;  %v902_v8 = vld [vmem:[#allocation2 + $0xc8] ss:$16 sps:$4 sm:$0xff]   ;;  %v903_v9 = vld [vmem:[#allocation2 + $0xa4] ss:$16 sps:$4 sm:$0xff]   ;;  %v905_v10 = vld [vmem:[#allocation2 + $0xac] ss:$16 sps:$4 sm:$0xff]  }
  0x2c   :  { %274 = vmatprep.subr.bf16.mxu0 %v897_v5  ;;  %315 = vmatprep.subr.bf16.mxu1 %v899_v6  ;;  %v907_v11 = vld [vmem:[#allocation2 + $0xa0] ss:$16 sps:$4 sm:$0xff]   ;;  %v908_v12 = vld [vmem:[#allocation2 + $0xa8] ss:$16 sps:$4 sm:$0xff]   ;;  %v909_v13 = vld [vmem:[#allocation2 + $0x84] ss:$16 sps:$4 sm:$0xff]  }
  0x2d   :  { %v911_v14 = vld [vmem:[#allocation2 + $0x8c] ss:$16 sps:$4 sm:$0xff]   ;;  %v913_v15 = vld [vmem:[#allocation2 + $0x80] ss:$16 sps:$4 sm:$0xff]   ;;  %v914_v16 = vld [vmem:[#allocation2 + $0x88] ss:$16 sps:$4 sm:$0xff]  }
  0x2e   :  { %v915_v17 = vld [vmem:[#allocation2 + $0x64] ss:$16 sps:$4 sm:$0xff]   ;;  %v917_v18 = vld [vmem:[#allocation2 + $0x6c] ss:$16 sps:$4 sm:$0xff]   ;;  %v919_v19 = vld [vmem:[#allocation2 + $0x60] ss:$16 sps:$4 sm:$0xff]  }
  0x2f   :  { %275 = vmatpush1.bf16.msra.mxu0 %v901_v7  ;;  %316 = vmatpush1.bf16.msra.mxu1 %v902_v8  ;;  %v920_v20 = vld [vmem:[#allocation2 + $0x68] ss:$16 sps:$4 sm:$0xff]   ;;  %v921_v21 = vld [vmem:[#allocation2 + $0x44] ss:$16 sps:$4 sm:$0xff]   ;;  %v923_v22 = vld [vmem:[#allocation2 + $0x4c] ss:$16 sps:$4 sm:$0xff]  }
  0x30   :  { %276 = vmatprep.subr.bf16.mxu0 %v903_v9  ;;  %317 = vmatprep.subr.bf16.mxu1 %v905_v10  ;;  %v925_v23 = vld [vmem:[#allocation2 + $0x40] ss:$16 sps:$4 sm:$0xff]   ;;  %v926_v24 = vld [vmem:[#allocation2 + $0x48] ss:$16 sps:$4 sm:$0xff]   ;;  %v927_v25 = vld [vmem:[#allocation2 + $0x24] ss:$16 sps:$4 sm:$0xff]  }
  0x31   :  { %v929_v26 = vld [vmem:[#allocation2 + $0x2c] ss:$16 sps:$4 sm:$0xff]   ;;  %v931_v27 = vld [vmem:[#allocation2 + $0x20] ss:$16 sps:$4 sm:$0xff]   ;;  %v932_v28 = vld [vmem:[#allocation2 + $0x28] ss:$16 sps:$4 sm:$0xff]  }
  0x32   :  { %v933_v29 = vld [vmem:[#allocation2 + $0x4] ss:$16 sps:$4 sm:$0xff]   ;;  %v935_v30 = vld [vmem:[#allocation2 + $0xc] ss:$16 sps:$4 sm:$0xff]   ;;  %v937_v31 = vld [vmem:[#allocation2] ss:$16 sps:$4 sm:$0xff]  }
  0x33   :  { %277 = vmatpush1.bf16.msra.mxu0 %v907_v11  ;;  %318 = vmatpush1.bf16.msra.mxu1 %v908_v12  ;;  %v938_v32 = vld [vmem:[#allocation2 + $0x8] ss:$16 sps:$4 sm:$0xff]   ;;  %v72_v33 = vld [vmem:[%s1173_s1] sm:$0xff]  ;;  %v944_v35 = vld [vmem:[%s1175_s3 + $0xc] ss:$16 sps:$4 sm:$0xff]   ;;  %vm374_vm0 = vcmask 130048  }
  0x34   :  { %278 = vmatprep.subr.bf16.mxu0 %v909_v13  ;;  %319 = vmatprep.subr.bf16.mxu1 %v911_v14  ;;  %v941_v34 = vld [vmem:[%s1175_s3 + $0x4] ss:$16 sps:$4 sm:$0xff]   ;;  %v79_v36 = vpack.c.bf16 %v72_v33, %v72_v33  ;;  %v939_v37 = vld [vmem:[%s1175_s3] ss:$16 sps:$4 sm:$0xff]   ;;  %v942_v38 = vld [vmem:[%s1175_s3 + $0x8] ss:$16 sps:$4 sm:$0xff]  }
  0x35   :  { %v947_v39 = vld [vmem:[#allocation4 + $0xac] ss:$12 sps:$4 sm:$0xff]   ;;  %v71_v40 = vld [vmem:[%s1172_s0] sm:$0xff]  ;;  %v945_v42 = vld [vmem:[#allocation4 + $0xa8] ss:$12 sps:$4 sm:$0xff]   ;;  %vm1072_vm1 = vmmov 0  }
  0x36   :  { %v74_v43 = vpack.c.bf16 %v71_v40, %v71_v40  ;;  %v948_v44 = vld [vmem:[#allocation4 + $0xb0] ss:$12 sps:$4 sm:$0xff]   ;;  %v951_v45 = vld [vmem:[#allocation4 + $0x94] ss:$12 sps:$4 sm:$0xff]   ;;  %v952_v47 = vld [vmem:[#allocation4 + $0x98] ss:$12 sps:$4 sm:$0xff]  }
  0x37   :  { %279 = vmatpush1.bf16.msra.mxu0 %v913_v15  ;;  %320 = vmatpush1.bf16.msra.mxu1 %v914_v16  ;;  %v949_v46 = vld [vmem:[#allocation4 + $0x90] ss:$12 sps:$4 sm:$0xff]   ;;  %v953_v49 = vld [vmem:[#allocation4 + $0x78] ss:$12 sps:$4 sm:$0xff]   ;;  %v956_v50 = vld [vmem:[#allocation4 + $0x80] ss:$12 sps:$4 sm:$0xff]  }
  0x38   :  { %280 = vmatprep.subr.bf16.mxu0 %v915_v17  ;;  %321 = vmatprep.subr.bf16.mxu1 %v917_v18  ;;  %v955_v48 = vld [vmem:[#allocation4 + $0x7c] ss:$12 sps:$4 sm:$0xff]   ;;  %v959_v51 = vld [vmem:[#allocation4 + $0x64] ss:$12 sps:$4 sm:$0xff]   ;;  %v957_v52 = vld [vmem:[#allocation4 + $0x60] ss:$12 sps:$4 sm:$0xff]  }
  0x39   :  { %v960_v53 = vld [vmem:[#allocation4 + $0x68] ss:$12 sps:$4 sm:$0xff]   ;;  %v963_v54 = vld [vmem:[#allocation4 + $0x4c] ss:$12 sps:$4 sm:$0xff]   ;;  %v964_v56 = vld [vmem:[#allocation4 + $0x50] ss:$12 sps:$4 sm:$0xff]  }
  0x3a   :  { %v961_v55 = vld [vmem:[#allocation4 + $0x48] ss:$12 sps:$4 sm:$0xff]   ;;  %v965_v58 = vld [vmem:[#allocation4 + $0x30] ss:$12 sps:$4 sm:$0xff]   ;;  %v968_v59 = vld [vmem:[#allocation4 + $0x38] ss:$12 sps:$4 sm:$0xff]  }
  0x3b   :  { %281 = vmatpush1.bf16.msra.mxu0 %v919_v19  ;;  %322 = vmatpush1.bf16.msra.mxu1 %v920_v20  ;;  %v967_v57 = vld [vmem:[#allocation4 + $0x34] ss:$12 sps:$4 sm:$0xff]   ;;  %v971_v60 = vld [vmem:[#allocation4 + $0x1c] ss:$12 sps:$4 sm:$0xff]   ;;  %v969_v61 = vld [vmem:[#allocation4 + $0x18] ss:$12 sps:$4 sm:$0xff]  }
  0x3c   :  { %282 = vmatprep.subr.bf16.mxu0 %v921_v21  ;;  %323 = vmatprep.subr.bf16.mxu1 %v923_v22  ;;  %v972_v62 = vld [vmem:[#allocation4 + $0x20] ss:$12 sps:$4 sm:$0xff]   ;;  %v975_v63 = vld [vmem:[#allocation4 + $0x4] ss:$12 sps:$4 sm:$0xff]   ;;  %v976_v1 = vld [vmem:[#allocation4 + $0x8] ss:$12 sps:$4 sm:$0xff]   ;;  %v462_v22 = vlaneseq }
  0x3d   :  { %v1158_v2 = vld [vmem:[%s1174_s2] sm:$0xff] }
  0x3e   :  { %v486_v3 = vpack.c.bf16 %v1158_v2, %v1158_v2 }
  0x3f   :  { %283 = vmatpush1.bf16.msra.mxu0 %v925_v23  ;;  %324 = vmatpush1.bf16.msra.mxu1 %v926_v24  ;;  %v463_v23 = vshrl.u32 %v462_v22, 7  ;;  %v519_v24 = vld [vmem:[#allocation6] sm:$0x7] }
  0x40   :  { %284 = vmatprep.subr.bf16.mxu0 %v927_v25  ;;  %325 = vmatprep.subr.bf16.mxu1 %v929_v26 }
  0x41   :  { %v464_v25 = vsub.s32 0, %v463_v23  ;;  %v468_v26 = vsub.s32 1, %v463_v23 }
  0x43   :  { %285 = vmatpush1.bf16.msra.mxu0 %v931_v27  ;;  %326 = vmatpush1.bf16.msra.mxu1 %v932_v28  ;;  %v524_v27 = vrot.slane %v519_v24, %v464_v25  ;;  %v528_v28 = vrot.slane %v519_v24, %v468_v26 }
  0x44   :  { %286 = vmatprep.subr.bf16.mxu0 %v933_v29  ;;  %327 = vmatprep.subr.bf16.mxu1 %v935_v30 }
  0x47   :  { %287 = vmatpush1.bf16.msra.mxu0 %v937_v31  ;;  %328 = vmatpush1.bf16.msra.mxu1 %v938_v32  ;;  %v472_v32 = vsub.s32 2, %v463_v23 }
  0x48   :  { %392 = vmatprep.subr.bf16.mxu0 %v941_v34  ;;  %433 = vmatprep.subr.bf16.mxu1 %v944_v35 }
  0x4a   :  { %305 = vmatmul.mubr.bf16.vlgmr.msra.gmra.mxu0 %v79_v36  ;;  %346 = vmatmul.mubr.bf16.vlgmr.msra.gmra.mxu1 %v79_v36  ;;  %v532_v36 = vrot.slane %v519_v24, %v472_v32 }
  0x4b   :  { %393 = vmatpush1.bf16.msra.mxu0 %v939_v37  ;;  %434 = vmatpush1.bf16.msra.mxu1 %v942_v38 }
  0x4c   :  { %410 = vmatprep.mubr.bf16.mxu0 %v1070_v0  ;;  %451 = vmatprep.mubr.bf16.mxu1 %v1070_v0 }
  0x4d   :  { %664 = vmatprep.subr.bf16.mxu0 %v947_v39  ;;  %861 = vmatprep.subr.bf16.mxu1 %v1071_v41 }
  0x52   :  { %823 = vmatmul.mubr.msk.bf16.vlgmr.msra.gmra.mxu0 %vm374_vm0, %v74_v43  ;;  %824 = vmatmul.mubr.msk.bf16.vlgmr.msra.gmra.mxu1 %vm374_vm0, %v74_v43 }
  0x53   :  { %665 = vmatpush1.bf16.msra.mxu0 %v945_v42  ;;  %862 = vmatpush3.bf16.msra.mxu1 %v948_v44 }
  0x54   :  { %666 = vmatprep.subr.bf16.mxu0 %v951_v45  ;;  %863 = vmatprep.subr.bf16.mxu1 %v1071_v41 }
  0x55   :  { %696 = vmatprep.mubr.bf16.mxu0 %v1070_v0  ;;  %877 = vmatprep.mubr.msk.bf16.mxu1 %vm1072_vm1, %v1071_v41  ;;  %v973_v0 = vld [vmem:[#allocation4] ss:$12 sps:$4 sm:$0xff]  }
  0x57   :  { %667 = vmatpush1.bf16.msra.mxu0 %v949_v46  ;;  %864 = vmatpush3.bf16.msra.mxu1 %v952_v47 }
  0x58   :  { %668 = vmatprep.subr.bf16.mxu0 %v955_v48  ;;  %865 = vmatprep.subr.bf16.mxu1 %v1071_v41 }
  0x5b   :  { %669 = vmatpush1.bf16.msra.mxu0 %v953_v49  ;;  %866 = vmatpush3.bf16.msra.mxu1 %v956_v50 }
  0x5c   :  { %670 = vmatprep.subr.bf16.mxu0 %v959_v51  ;;  %867 = vmatprep.subr.bf16.mxu1 %v1071_v41 }
  0x5f   :  { %671 = vmatpush1.bf16.msra.mxu0 %v957_v52  ;;  %868 = vmatpush3.bf16.msra.mxu1 %v960_v53 }
  0x60   :  { %672 = vmatprep.subr.bf16.mxu0 %v963_v54  ;;  %869 = vmatprep.subr.bf16.mxu1 %v1071_v41 }
  0x63   :  { %673 = vmatpush1.bf16.msra.mxu0 %v961_v55  ;;  %870 = vmatpush3.bf16.msra.mxu1 %v964_v56 }
  0x64   :  { %674 = vmatprep.subr.bf16.mxu0 %v967_v57  ;;  %871 = vmatprep.subr.bf16.mxu1 %v1071_v41 }
  0x67   :  { %675 = vmatpush1.bf16.msra.mxu0 %v965_v58  ;;  %872 = vmatpush3.bf16.msra.mxu1 %v968_v59  ;;  %v476_v58 = vsub.s32 3, %v463_v23 }
  0x68   :  { %676 = vmatprep.subr.bf16.mxu0 %v971_v60  ;;  %873 = vmatprep.subr.bf16.mxu1 %v1071_v41 }
  0x6b   :  { %677 = vmatpush1.bf16.msra.mxu0 %v969_v61  ;;  %874 = vmatpush3.bf16.msra.mxu1 %v972_v62 }
  0x6c   :  { %678 = vmatprep.subr.bf16.mxu0 %v975_v63  ;;  %875 = vmatprep.subr.bf16.mxu1 %v1071_v41  ;;  %v460_v41 = vld [vmem:[%s1178_s6] sm:$0xf] }
  0x6d   :  { %v465_v44 = vrot.slane %v460_v41, %v464_v25  ;;  %v469_v46 = vrot.slane %v460_v41, %v468_v26  ;;  %v473_v55 = vrot.slane %v460_v41, %v472_v32  ;;  %v477_v60 = vrot.slane %v460_v41, %v476_v58 }
  0x6f   :  { %679 = vmatpush1.bf16.msra.mxu0 %v973_v0  ;;  %876 = vmatpush3.bf16.msra.mxu1 %v976_v1 }
  0x72   :  { %697 = vmatmul.mubr.bf16.vlgmr.msra.gmra.mxu0 %v486_v3  ;;  %878 = vmatmul.mubr.bf16.vlgmr.msra.gmra.mxu1 %v486_v3 }
 0x10a   :  { %v306_v4 = vpop.f32.mrf.mxu0  ;;  %v347_v5 = vpop.f32.mrf.mxu1 }
 0x10c   :  { %v308_v6 = vpop.f32.mrf.mxu0  ;;  %v349_v7 = vpop.f32.mrf.mxu1 }
 0x10e   :  { %v310_v8 = vpop.f32.mrf.mxu0  ;;  %v351_v9 = vpop.f32.mrf.mxu1 }
 0x110   :  { %v311_v10 = vpop.f32.mrf.mxu0  ;;  %v352_v11 = vpop.f32.mrf.mxu1 }
 0x112   :  { %v412_v12 = vpop.f32.mrf.mxu0  ;;  %v453_v13 = vpop.f32.mrf.mxu1 }
 0x113   :  { %v454_v14 = vadd.f32 %v453_v13, %v347_v5  ;;  %v413_v43 = vadd.f32 %v412_v12, %v306_v4 }
 0x114   :  { %v414_v15 = vpop.f32.mrf.mxu0  ;;  %v455_v16 = vpop.f32.mrf.mxu1 }
 0x115   :  { %v456_v17 = vadd.f32 %v455_v16, %v349_v7  ;;  %v415_v45 = vadd.f32 %v414_v15, %v308_v6  ;;  %v482_v47 = vadd.f32 %v465_v44, %v413_v43  ;;  %v484_v57 = vadd.f32 %v473_v55, %v454_v14 }
 0x116   :  { %v416_v18 = vpop.f32.mrf.mxu0  ;;  %v457_v19 = vpop.f32.mrf.mxu1 }
 0x117   :  { %v483_v49 = vadd.f32 %v469_v46, %v415_v45  ;;  %v485_v63 = vadd.f32 %v477_v60, %v456_v17 }
 0x118   :  { %v417_v20 = vpop.f32.mrf.mxu0  ;;  %v458_v21 = vpop.f32.mrf.mxu1 }
 0x132   :  { %v698_v29 = vpop.f32.mrf.mxu0  ;;  %v739_v30 = vpop.f32.mrf.mxu1 }
 0x133   :  { %v699_v31 = vadd.f32 %v698_v29, %v524_v27  ;;  %v740_v42 = vadd.f32 %v739_v30, %v532_v36 }
 0x134   :  { %v700_v33 = vpop.f32.mrf.mxu0  ;;  %v879_v34 = vpop.f32.mrf.mxu1 }
 0x135   :  { %977 = vtanh.f32 %v699_v31  ;;  %v701_v35 = vadd.f32 %v700_v33, %v528_v28 }
 0x136   :  { %v702_v37 = vpop.f32.mrf.mxu0  ;;  %v742_v38 = vpop.f32.mrf.mxu1 }
 0x137   :  { %979 = vtanh.f32 %v701_v35 }
 0x138   :  { %v703_v39 = vpop.f32.mrf.mxu0  ;;  %v880_v40 = vpop.f32.mrf.mxu1  ;;  %981 = vtanh.f32 %v740_v42 }
 0x142   :  { %v978_v48 = vpop.eup %977 }
 0x143   :  { %v748_v50 = vadd.f32 %v978_v48, %v482_v47 }
 0x144   :  { %v980_v51 = vpop.eup %979 }
 0x145   :  { %v849_v52 = vmul.f32 -1.442695, %v748_v50  ;;  %v749_v53 = vadd.f32 %v980_v51, %v483_v49  ;;  %v982_v56 = vpop.eup %981 }
 0x146   :  { %v750_v59 = vadd.f32 %v982_v56, %v484_v57 }
 0x147   :  { %983 = vpow2.f32 %v849_v52  ;;  %v850_v54 = vmul.f32 -1.442695, %v749_v53 }
 0x148   :  { %v851_v61 = vmul.f32 -1.442695, %v750_v59 }
 0x149   :  { %985 = vpow2.f32 %v850_v54 }
 0x14a   :  { %987 = vpow2.f32 %v851_v61 }
 0x154   :  { %v984_v62 = vpop.eup %983 }
 0x155   :  { %v760_v0 = vadd.f32 1.0, %v984_v62 }
 0x156   :  { %v986_v1 = vpop.eup %985 }
 0x157   :  { %989 = vrcp.f32 %v760_v0  ;;  %v761_v3 = vadd.f32 1.0, %v986_v1  ;;  %v988_v4 = vpop.eup %987 }
 0x158   :  { %991 = vtanh.f32 %v485_v63  ;;  %v762_v8 = vadd.f32 1.0, %v988_v4 }
 0x159   :  { %993 = vrcp.f32 %v761_v3 }
 0x15a   :  { %995 = vrcp.f32 %v762_v8 }
 0x164   :  { %v990_v5 = vpop.eup %989 }
 0x165   :  { %v992_v6 = vpop.eup %991 }
 0x166   :  { %v994_v7 = vpop.eup %993  ;;  %v771_v9 = vmul.f32 %v992_v6, %v990_v5 }
 0x167   :  { %v770_v10 = vmul.f32 %v994_v7, %v1158_v2  ;;  %v996_v12 = vpop.eup %995 }
 0x169   :  { %v772_v11 = vadd.f32 %v771_v9, %v770_v10 }
 0x16b   :  { %997 = vtanh.f32 %v772_v11  ;;  %776 = vst [vmem:[%s1181_s9] sm:$0xff] %v772_v11 }
 0x178   :  { %v998_v13 = vpop.eup %997 }
 0x179   :  { %v774_v14 = vmul.f32 %v998_v13, %v996_v12 }
 0x17b   :  { %775 = vst [vmem:[%s1180_s8] sm:$0xff] %v774_v14 }
 0x17c   :  { %785 = vsyncpa [#allocation3], 1 }
 0x17d   :  { %786 = vsyncpa [#allocation5], 1 }

</bundles_post_ra>
